<compile_context>
chip_gen: v7x
topology: tpu7x:2x2x1
jax: 0.10.0
libtpu: 0.0.40
codegen_flags: <defaults>
</compile_context>

<pallas_src>
import functools

import jax
import jax.numpy as jnp
from jax import lax
from jax.experimental import pallas as pl
from jax.experimental.pallas import tpu as pltpu


def _apply_act(y, act):
    if act is None:
        return y
    act = act.lower()
    if act == 'relu':
        return jnp.maximum(y, 0.0)
    if act == 'silu':
        return y * jax.nn.sigmoid(y)
    if act == 'gelu':
        # exact (erf) form to match PyTorch nn.GELU default
        return jax.nn.gelu(y, approximate=False)
    if act == 'leaky_relu':
        return jnp.where(y >= 0, y, 0.01 * y)
    raise RuntimeError(f'unsupported act: {act}')


def _conv_bn_act_kernel(w_ref, s_ref, b_ref, x_ref, o_ref, *, K, W_pad, M_step, act):
    """One grid step = one row-tile of one image.

    x_ref : (1, Lflat, K*Cin)      bf16, kw-packed flattened padded image
                                   (resident across the image's row tiles)
    w_ref : (K, K*Cin, Cout_pad)   bf16, VMEM-resident (constant index_map)
    s_ref : (1, Cout_pad)          f32, folded BN scale
    b_ref : (1, Cout_pad)          f32, folded BN bias
    o_ref : (1, M_step, Cout_pad)  bf16, stride-1 conv output rows of this tile
    """
    base = pl.program_id(1) * M_step   # flat offset of this row tile

    # K dot-accumulates; kw taps are already folded into the contraction dim,
    # every slice start is a multiple of 8 (W_pad % 8 == 0).
    start = pl.multiple_of(base, 8)
    acc = jnp.dot(x_ref[0, pl.ds(start, M_step), :], w_ref[0],
                  preferred_element_type=jnp.float32)
    for kh in range(1, K):
        start = pl.multiple_of(base + kh * W_pad, 8)
        acc = acc + jnp.dot(x_ref[0, pl.ds(start, M_step), :], w_ref[kh],
                            preferred_element_type=jnp.float32)

    y = acc * s_ref[...] + b_ref[...]          # fused (inference) BatchNorm, f32
    o_ref[0] = _apply_act(y, act).astype(o_ref.dtype)


def _largest_divisor_leq(n, cap):
    cap = max(1, min(n, cap))
    for d in range(cap, 0, -1):
        if n % d == 0:
            return d
    return 1


def conv_norm_layer(x_nchw, weight, gamma, beta, running_mean, running_var,
                    *, stride=1, padding=None, act=None, eps=1e-5):
    """Pallas implementation of ConvNormLayer.forward (eval-mode BatchNorm).

    x_nchw:  (N, Cin, H, W)    float32
    weight:  (Cout, Cin, K, K) float32 (PyTorch Conv2d layout, bias=False)
    returns: (N, Cout, H_out, W_out) float32
    """
    N, Cin, H, W = x_nchw.shape
    Cout, _, K, _ = weight.shape
    pad = (K - 1) // 2 if padding is None else padding
    H_out = (H + 2 * pad - K) // stride + 1
    W_out = (W + 2 * pad - K) // stride + 1

    H_pad = H + 2 * pad
    W_valid = W + 2 * pad
    W_pad = ((W_valid + 7) // 8) * 8     # sublane-aligned row pitch
    H1 = H_pad - K + 1                   # stride-1 output rows
    M_img = H1 * W_pad                   # stride-1 outputs/image (incl. garbage cols)
    Lflat = H_pad * W_pad
    Cp = K * Cin                         # kw-packed channel width
    Cout_pad = ((Cout + 127) // 128) * 128

    # Row tiling: TR output rows per grid step (largest divisor of H1 that keeps
    # the per-step matmul M dimension <= ~1024 rows).
    TR = _largest_divisor_leq(H1, max(1, 1024 // W_pad))
    M_step = TR * W_pad
    RT = H1 // TR

    # ---- host-side layout prep -------------------------------------------
    x = jnp.transpose(x_nchw, (0, 2, 3, 1)).astype(jnp.bfloat16)              # NHWC bf16
    # spatial pad; right-pad width to W_pad + (K-1) so kw-shifted views exist
    x = jnp.pad(x, ((0, 0), (pad, pad),
                    (pad, W_pad + (K - 1) - W - pad), (0, 0)))
    # pack the K kw-taps into the channel (lane) axis: (N, H_pad, W_pad, K*Cin)
    x = jnp.concatenate([x[:, :, kw:kw + W_pad, :] for kw in range(K)], axis=-1)
    x = x.reshape(N, Lflat, Cp)                                               # flat spatial

    # weight (Cout, Cin, K, K) -> (K, K*Cin, Cout_pad), matching kw-packed order
    w = jnp.transpose(weight, (2, 3, 1, 0)).reshape(K, K * Cin, Cout)
    w = jnp.pad(w, ((0, 0), (0, 0), (0, Cout_pad - Cout))).astype(jnp.bfloat16)

    # fold BatchNorm (inference mode) into per-channel scale / bias (f32)
    scale = gamma / jnp.sqrt(running_var + eps)
    bias = beta - running_mean * scale
    scale = jnp.pad(scale, (0, Cout_pad - Cout)).reshape(1, Cout_pad).astype(jnp.float32)
    bias = jnp.pad(bias, (0, Cout_pad - Cout)).reshape(1, Cout_pad).astype(jnp.float32)

    kernel = functools.partial(_conv_bn_act_kernel, K=K, W_pad=W_pad,
                               M_step=M_step, act=act)

    cost = pl.CostEstimate(
        flops=2 * N * M_img * K * K * Cin * Cout_pad,
        transcendentals=(N * M_img * Cout_pad) if act in ('silu', 'gelu') else 0,
        bytes_accessed=int(x.size * 2 + w.size * 2 + N * M_img * Cout_pad * 2
                           + 2 * Cout_pad * 4),
    )

    # VMEM limit: 75% of the chip's physical VMEM (capped), never 100% of v7x.
    try:
        vmem_cap = pltpu.get_tpu_info().vmem_capacity_bytes
        vmem_limit = min((int(vmem_cap) * 3) // 4, 100 * 1024 * 1024)
    except Exception:
        vmem_limit = None   # fall back to the compiler default
    cparams_kwargs = dict(dimension_semantics=("parallel", "parallel"))
    if vmem_limit is not None:
        cparams_kwargs["vmem_limit_bytes"] = vmem_limit

    out_flat = pl.pallas_call(
        kernel,
        out_shape=jax.ShapeDtypeStruct((N, M_img, Cout_pad), jnp.bfloat16),
        grid_spec=pltpu.PrefetchScalarGridSpec(
            num_scalar_prefetch=0,
            grid=(N, RT),
            in_specs=[
                pl.BlockSpec((K, K * Cin, Cout_pad), lambda n, r: (0, 0, 0)),  # weights: resident
                pl.BlockSpec((1, Cout_pad), lambda n, r: (0, 0)),              # BN scale: resident
                pl.BlockSpec((1, Cout_pad), lambda n, r: (0, 0)),              # BN bias : resident
                pl.BlockSpec((1, Lflat, Cp), lambda n, r: (n, 0, 0)),          # image: once / image
            ],
            out_specs=pl.BlockSpec((1, M_step, Cout_pad), lambda n, r: (n, r, 0)),
        ),
        compiler_params=pltpu.CompilerParams(**cparams_kwargs),
        cost_estimate=cost,
    )(w, scale, bias, x)

    # drop garbage columns / padded channels, apply stride by subsampling, back to NCHW
    out = out_flat.reshape(N, H1, W_pad, Cout_pad)
    out = out[:, ::stride, ::stride, :Cout][:, :H_out, :W_out, :]
    return jnp.transpose(out, (0, 3, 1, 2)).astype(jnp.float32)


def _reference(x_nchw, weight, gamma, beta, mean, var, *, stride, padding, act, eps=1e-5):
    y = lax.conv_general_dilated(
        x_nchw, weight, window_strides=(stride, stride),
        padding=[(padding, padding), (padding, padding)],
        dimension_numbers=('NCHW', 'OIHW', 'NCHW'),
        precision=lax.Precision.HIGHEST)
    s = (gamma / jnp.sqrt(var + eps)).reshape(1, -1, 1, 1)
    b = (beta - mean * gamma / jnp.sqrt(var + eps)).reshape(1, -1, 1, 1)
    return _apply_act(y * s + b, act)


if __name__ == "__main__":
    # ConvNormLayer(ch_in=4, ch_out=8, kernel_size=3, stride=1, act='silu')
    N, Cin, H, W = 2, 4, 16, 16
    Cout, K, stride = 8, 3, 1
    pad = (K - 1) // 2
    act = 'silu'

    key = jax.random.PRNGKey(0)
    kx, kw_, kg, kb, km, kv = jax.random.split(key, 6)
    x = jax.random.normal(kx, (N, Cin, H, W), dtype=jnp.float32)
    weight = jax.random.normal(kw_, (Cout, Cin, K, K), dtype=jnp.float32) * 0.1
    gamma = jax.random.normal(kg, (Cout,), dtype=jnp.float32) * 0.1 + 1.0
    beta = jax.random.normal(kb, (Cout,), dtype=jnp.float32) * 0.1
    running_mean = jax.random.normal(km, (Cout,), dtype=jnp.float32) * 0.1
    running_var = jnp.abs(jax.random.normal(kv, (Cout,), dtype=jnp.float32)) * 0.1 + 0.9

    out = conv_norm_layer(x, weight, gamma, beta, running_mean, running_var,
                          stride=stride, padding=pad, act=act)
    out = jax.block_until_ready(out)

    # Reference uses the same bf16-rounded conv operands the kernel feeds the
    # MXU (f32 accumulation on both sides); tolerance also covers the kernel's
    # bf16 output store.
    x_r = x.astype(jnp.bfloat16).astype(jnp.float32)
    w_r = weight.astype(jnp.bfloat16).astype(jnp.float32)
    ref = _reference(x_r, w_r, gamma, beta, running_mean, running_var,
                     stride=stride, padding=pad, act=act)

    assert out.shape == (N, Cout, H, W), out.shape
    err = float(jnp.max(jnp.abs(out - ref)))
    assert jnp.allclose(out, ref, atol=2e-2, rtol=2e-2), err
    print("KERNEL_OK")
</pallas_src>

<mosaic_0001>
module attributes {stable_mosaic.version = 11 : i64} {
  func.func @_conv_bn_act_kernel(%arg0: i32, %arg1: i32, %arg2: memref<3x12x128xbf16, #tpu.memory_space<vmem>>, %arg3: memref<1x128xf32, #tpu.memory_space<vmem>>, %arg4: memref<1x128xf32, #tpu.memory_space<vmem>>, %arg5: memref<1x432x12xbf16, #tpu.memory_space<vmem>>, %arg6: memref<1x384x128xbf16, #tpu.memory_space<vmem>>) attributes {dimension_semantics = [#tpu.dimension_semantics<parallel>, #tpu.dimension_semantics<parallel>], iteration_bounds = array<i64: 2, 1>, scalar_prefetch = 0 : i64, scratch_operands = 0 : i64, tpu.core_type = #tpu.core_type<tc>, window_params = [{pipeline_mode = #tpu.pipeline_mode<synchronous>, transform_indices = @transform_0, window_bounds = array<i64: 3, 12, 128>}, {pipeline_mode = #tpu.pipeline_mode<synchronous>, transform_indices = @transform_1, window_bounds = array<i64: 1, 128>}, {pipeline_mode = #tpu.pipeline_mode<synchronous>, transform_indices = @transform_2, window_bounds = array<i64: 1, 128>}, {transform_indices = @transform_3, window_bounds = array<i64: 1, 432, 12>}, {transform_indices = @transform_4, window_bounds = array<i64: 1, 384, 128>}]} {
    %c384_i32 = arith.constant 384 : i32
    %0 = arith.muli %arg1, %c384_i32 : i32
    %1 = tpu.assume_multiple %0, 8 : i32
    %c0 = arith.constant 0 : index
    %2 = arith.index_cast %1 : i32 to index
    %c0_0 = arith.constant 0 : index
    %3 = vector.load %arg5[%c0, %2, %c0_0] : memref<1x432x12xbf16, #tpu.memory_space<vmem>>, vector<1x384x12xbf16>
    %4 = vector.shape_cast %3 : vector<1x384x12xbf16> to vector<384x12xbf16>
    %c0_1 = arith.constant 0 : index
    %c0_2 = arith.constant 0 : index
    %c0_3 = arith.constant 0 : index
    %5 = vector.load %arg2[%c0_1, %c0_2, %c0_3] : memref<3x12x128xbf16, #tpu.memory_space<vmem>>, vector<1x12x128xbf16>
    %6 = vector.shape_cast %5 : vector<1x12x128xbf16> to vector<12x128xbf16>
    %cst = arith.constant dense<0.000000e+00> : vector<384x128xf32>
    %7 = tpu.matmul %4, %6, %cst {dimension_numbers = #tpu.dot_dimension_numbers<[1], [0], [0], [1], [0, 0, 1, 1], [], []>} : vector<384x12xbf16>, vector<12x128xbf16>, vector<384x128xf32> -> vector<384x128xf32>
    %c24_i32 = arith.constant 24 : i32
    %8 = arith.addi %0, %c24_i32 : i32
    %9 = tpu.assume_multiple %8, 8 : i32
    %c0_4 = arith.constant 0 : index
    %10 = arith.index_cast %9 : i32 to index
    %c0_5 = arith.constant 0 : index
    %11 = vector.load %arg5[%c0_4, %10, %c0_5] : memref<1x432x12xbf16, #tpu.memory_space<vmem>>, vector<1x384x12xbf16>
    %12 = vector.shape_cast %11 : vector<1x384x12xbf16> to vector<384x12xbf16>
    %c1 = arith.constant 1 : index
    %c0_6 = arith.constant 0 : index
    %c0_7 = arith.constant 0 : index
    %13 = vector.load %arg2[%c1, %c0_6, %c0_7] : memref<3x12x128xbf16, #tpu.memory_space<vmem>>, vector<1x12x128xbf16>
    %14 = vector.shape_cast %13 : vector<1x12x128xbf16> to vector<12x128xbf16>
    %cst_8 = arith.constant dense<0.000000e+00> : vector<384x128xf32>
    %15 = tpu.matmul %12, %14, %cst_8 {dimension_numbers = #tpu.dot_dimension_numbers<[1], [0], [0], [1], [0, 0, 1, 1], [], []>} : vector<384x12xbf16>, vector<12x128xbf16>, vector<384x128xf32> -> vector<384x128xf32>
    %16 = arith.addf %7, %15 : vector<384x128xf32>
    %c48_i32 = arith.constant 48 : i32
    %17 = arith.addi %0, %c48_i32 : i32
    %18 = tpu.assume_multiple %17, 8 : i32
    %c0_9 = arith.constant 0 : index
    %19 = arith.index_cast %18 : i32 to index
    %c0_10 = arith.constant 0 : index
    %20 = vector.load %arg5[%c0_9, %19, %c0_10] : memref<1x432x12xbf16, #tpu.memory_space<vmem>>, vector<1x384x12xbf16>
    %21 = vector.shape_cast %20 : vector<1x384x12xbf16> to vector<384x12xbf16>
    %c2 = arith.constant 2 : index
    %c0_11 = arith.constant 0 : index
    %c0_12 = arith.constant 0 : index
    %22 = vector.load %arg2[%c2, %c0_11, %c0_12] : memref<3x12x128xbf16, #tpu.memory_space<vmem>>, vector<1x12x128xbf16>
    %23 = vector.shape_cast %22 : vector<1x12x128xbf16> to vector<12x128xbf16>
    %cst_13 = arith.constant dense<0.000000e+00> : vector<384x128xf32>
    %24 = tpu.matmul %21, %23, %cst_13 {dimension_numbers = #tpu.dot_dimension_numbers<[1], [0], [0], [1], [0, 0, 1, 1], [], []>} : vector<384x12xbf16>, vector<12x128xbf16>, vector<384x128xf32> -> vector<384x128xf32>
    %25 = arith.addf %16, %24 : vector<384x128xf32>
    %c0_14 = arith.constant 0 : index
    %c0_15 = arith.constant 0 : index
    %26 = vector.load %arg3[%c0_14, %c0_15] : memref<1x128xf32, #tpu.memory_space<vmem>>, vector<1x128xf32>
    %27 = vector.broadcast %26 : vector<1x128xf32> to vector<384x128xf32>
    %28 = arith.mulf %25, %27 : vector<384x128xf32>
    %c0_16 = arith.constant 0 : index
    %c0_17 = arith.constant 0 : index
    %29 = vector.load %arg4[%c0_16, %c0_17] : memref<1x128xf32, #tpu.memory_space<vmem>>, vector<1x128xf32>
    %30 = vector.broadcast %29 : vector<1x128xf32> to vector<384x128xf32>
    %31 = arith.addf %28, %30 : vector<384x128xf32>
    %32 = arith.negf %31 : vector<384x128xf32>
    %33 = math.exp %32 : vector<384x128xf32>
    %cst_18 = arith.constant 1.000000e+00 : f32
    %34 = vector.broadcast %cst_18 : f32 to vector<384x128xf32>
    %35 = arith.addf %34, %33 : vector<384x128xf32>
    %36 = arith.divf %34, %35 : vector<384x128xf32>
    %37 = arith.mulf %31, %36 : vector<384x128xf32>
    %38 = arith.truncf %37 : vector<384x128xf32> to vector<384x128xbf16>
    %c0_19 = arith.constant 0 : index
    %c0_20 = arith.constant 0 : index
    %c0_21 = arith.constant 0 : index
    %39 = vector.load %arg6[%c0_19, %c0_20, %c0_21] : memref<1x384x128xbf16, #tpu.memory_space<vmem>>, vector<1x384x128xbf16>
    %40 = vector.shape_cast %39 : vector<1x384x128xbf16> to vector<384x128xbf16>
    %41 = vector.shape_cast %38 : vector<384x128xbf16> to vector<1x384x128xbf16>
    tpu.vector_store %arg6[%c0_19, %c0_20, %c0_21], %41 {strides = array<i32>} : memref<1x384x128xbf16, #tpu.memory_space<vmem>>, vector<1x384x128xbf16>,
    return
  }
  func.func @transform_0(%arg0: i32, %arg1: i32) -> (i32, i32, i32) {
    %c0_i32 = arith.constant 0 : i32
    %c0_i32_0 = arith.constant 0 : i32
    %c0_i32_1 = arith.constant 0 : i32
    %c0_i32_2 = arith.constant 0 : i32
    return %c0_i32, %c0_i32_0, %c0_i32_1 : i32, i32, i32
  }
  func.func @transform_1(%arg0: i32, %arg1: i32) -> (i32, i32) {
    %c0_i32 = arith.constant 0 : i32
    %c0_i32_0 = arith.constant 0 : i32
    %c0_i32_1 = arith.constant 0 : i32
    return %c0_i32, %c0_i32_0 : i32, i32
  }
  func.func @transform_2(%arg0: i32, %arg1: i32) -> (i32, i32) {
    %c0_i32 = arith.constant 0 : i32
    %c0_i32_0 = arith.constant 0 : i32
    %c0_i32_1 = arith.constant 0 : i32
    return %c0_i32, %c0_i32_0 : i32, i32
  }
  func.func @transform_3(%arg0: i32, %arg1: i32) -> (i32, i32, i32) {
    %c0_i32 = arith.constant 0 : i32
    %c0_i32_0 = arith.constant 0 : i32
    %c0_i32_1 = arith.constant 0 : i32
    return %arg0, %c0_i32, %c0_i32_0 : i32, i32, i32
  }
  func.func @transform_4(%arg0: i32, %arg1: i32) -> (i32, i32, i32) {
    %c0_i32 = arith.constant 0 : i32
    %c0_i32_0 = arith.constant 0 : i32
    return %arg0, %arg1, %c0_i32 : i32, i32, i32
  }
}

</mosaic_0001>

<bundles_post_ra>
// kernel: tpu_custom_call.1
= control target key start
LH: loop header
LB: loop body
LE: loop exit
PB: predicated region body
PF: predicated region fallthrough
CT: control target
= control target key end

     0   :  { %9 = vsyncpa [#allocation3], 0  ;;  %s4457_s0 = inlined_call_operand.vmem [shape: bf16[3,12,128], index: 0, kind: input, shape index: {}]   ;;  %s4458_s1 = inlined_call_operand.vmem [shape: f32[1,128], index: 1, kind: input, shape index: {}]   ;;  %s4459_s2 = inlined_call_operand.vmem [shape: f32[1,128], index: 2, kind: input, shape index: {}]   ;;  %s4460_s3 = inlined_call_operand.vmem [shape: bf16[2,432,12], index: 3, kind: input, shape index: {}]   ;;  %s4461_s4 = inlined_call_operand.hbm [shape: bf16[2,384,128], index: 4, kind: output, shape index: {}]  }
   0x1   :  { %11 = vsyncpa [#allocation3 + $0x1], 0  ;;  %s3794_s15 = smov 0   ;;  %s3796_s16 = smov 0  }
   0x2   :  { %s3798_s17 = smov 0   ;;  %s3800_s18 = smov 0  }
   0x3   :  { %s3802_s19 = smov 0   ;;  %s3804_s20 = smov 0  }
   0x4 LB: > { %s2485_s21 = sadd.s32 4294967295, %s3764_s20   ;;  %s2486_s22 = sadd.s32 4294967294, %s3764_s20   ;;  %s3764_s20 = sphi %s3804_s20, %s17_s20   ;;  %s3760_s19 = sphi %s3802_s19, %s4468_s19   ;;  %s3756_s18 = sphi %s3800_s18, %s4467_s18   ;;  %s3752_s17 = sphi %s3798_s17, %s4466_s17   ;;  %s3748_s16 = sphi %s3796_s16, %s4465_s16   ;;  %s3744_s15 = sphi %s3794_s15, %s4464_s15  }
   0x5   : > { %s29_s23 = sadd.s32 1, %s3760_s19  ;;  %s127_s24 = sadd.s32 1, %s3752_s17 }
   0x6   : > { %p31_p0 = scmp.ge.s32.totalorder %s29_s23, 2  ;;  %p137_p1 = scmp.ne.s32.totalorder %s3752_s17, %s3748_s16 }
   0x7   : > { %p138_p2 = scmp.eq.s32.totalorder %s2485_s21, 1  ;;  %p143_p3 = scmp.ne.s32.totalorder %s3748_s16, %s3744_s15 }
   0x8   : > { %s4470_s23 = smov (%p31_p0, %s29_s23), 0  ;;  %p144_p5 = scmp.eq.s32.totalorder %s2486_s22, 1 }
   0x9   : > { %p3834_p4 = por %p138_p2, %p137_p1  ;;  %s122_s26 = ssub.s32 %s3760_s19, %s4470_s23 }
   0xa   : > { %p2489_p6 = scmp.ge.s32.totalorder %s3764_s20, 1  ;;  %p125_p7 = scmp.eq.s32.totalorder %s122_s26, 0 }
   0xb   : > { %p3841_p8 = por %p144_p5, %p143_p3  ;;  %p179_p9 = scmp.lt.s32.totalorder %s3764_s20, 3 }
   0xc   : > { %s3847_s28 = scalar_select %p125_p7, %s3752_s17, %s127_s24  }
   0xd   : > { %p180_p10 = pnand %p2489_p6, %p179_p9 }
   0xe   : > { %v3417_v0 = vld [vmem:[%s4457_s0 + $0x8] sm:$0x3f] (!%p180_p10)   ;;  %vm521_vm0 = vcmask (!%p180_p10), 1045504   ;;  %p205_p11 = scmp.lt.s32.totalorder (!%p180_p10), %s3756_s18, 1  ;;  %v3418_v1 = vld [vmem:[%s4457_s0] sm:$0x3f] (!%p180_p10)  }
   0xf   : > { %183 = sbr.rel (%p180_p10) target bundleno = 443 (0x1bb), region = 36  ;;  %3353 = vmatprep.subr.msk.bf16.mxu1 (!%p180_p10), %vm521_vm0, %v3417_v0  ;;  %v523_v2 = vsel (!%p180_p10), %vm521_vm0, %v3417_v0, 0  ;;  %v3421_v3 = vld [vmem:[%s4457_s0 + $0x10] sm:$0x3f] (!%p180_p10)   ;;  %3354 = vmatprep.subr.msk.bf16.mxu0 (!%p180_p10), %vm521_vm0, %v3418_v1  ;;  %v948_v4 = vsel (!%p180_p10), %vm521_vm0, %v3418_v1, 0  ;;  %vm448_vm1 = vcmask (!%p180_p10), 97280  }
  0x10   : > { %3106 = vmatpush3.bf16.msra.mxu1 (!%p180_p10), %v523_v2  ;;  %3156 = vmatpush3.bf16.msra.mxu0 (!%p180_p10), %v948_v4  ;;  %v1429_v9 = vsel (!%p180_p10), %vm521_vm0, %v3421_v3, 0  ;;  %s202_s26 = sand.u32 (!%p180_p10), 1, %s3748_s16   ;;  %s3359_s9 = smul.u32 (!%p180_p10), 3072, %s3756_s18 }
  0x11   : > { %3355 = vmatprep.subr.msk.bf16.mxu1 (!%p180_p10), %vm521_vm0, %v3418_v1  ;;  %3356 = vmatprep.subr.msk.bf16.mxu0 (!%p180_p10), %vm521_vm0, %v3421_v3  ;;  %s4143_s29 = smul.u32 (!%p180_p10), 192, %s202_s26  ;;  %s3766_s21 = smov (!%p180_p10), [#allocation2]  }
  0x12   : > { %s3690_s22 = sshll.u32 (!%p180_p10), %s3766_s21, 4  ;;  %s3691_s22 = int_to_ptr.vmem [resolvable:$false] %s3690_s22 }
  0x13   : > { %s4169_s30 = scalar_lea.vmem (!%p180_p10), [#allocation2], %s4143_s29  ;;  %s3692_s24 = scalar_lea.vmem (!%p180_p10), %s3691_s22, 6144 }
  0x16   : > { %s206_s7 = scalar_select %p205_p11, %s3756_s18, 1 }
  0x17   : > { %s4411_s18 = scalar_lea.sflag [#allocation3], %s202_s26 }
  0x18   : > { %s3358_s10 = smul.u32 216, %s206_s7 }
  0x1a   : > { %s3869_s13 = scalar_lea.vmem %s4460_s3, %s3358_s10  ;;  %s2406_s10 = sshll.u32 %s4169_s30, 4  ;;  %s4405_s10 = int_to_ptr.vmem [resolvable:$true] %s2406_s10 }
  0x1b   : > { %v3419_v5 = vld [vmem:[%s3869_s13 + $0xc] sm:$0xff]   ;;  %v3420_v6 = vld [vmem:[%s3869_s13] sm:$0xff]   ;;  %v3422_v7 = vld [vmem:[%s3869_s13 + $0x14] sm:$0xff]   ;;  %s3686_s14 = scalar_lea.vmem %s4405_s10, 3072  ;;  %p3693_p1 = scmp.lt.s32.totalorder %s4405_s10, %s3691_s22 }
  0x1c   : > { %3107 = vmatprep.mubr.msk.bf16.mxu1 %vm448_vm1, %v3419_v5  ;;  %3157 = vmatprep.mubr.msk.bf16.mxu0 %vm448_vm1, %v3420_v6  ;;  %v3423_v8 = vld [vmem:[%s3869_s13 + $0x8] sm:$0xff]   ;;  %v3424_v10 = vld [vmem:[%s3869_s13 + $0x1c] sm:$0xff]   ;;  %v3425_v11 = vld [vmem:[%s3869_s13 + $0x10] sm:$0xff]   ;;  %p3687_p12 = scmp.ne.s32.totalorder %s4405_s10, %s3686_s14  ;;  %p3694_p2 = scmp.lt.s32.totalorder %s3692_s24, %s3686_s14 }
  0x1d   : > { %3108 = vmatmul.mubr.msk.bf16.vlgmr.msra.gmra.mrb[0].mxu1 %vm448_vm1, %v3422_v7  ;;  %3158 = vmatmul.mubr.msk.bf16.vlgmr.msra.gmra.mrb[0].mxu0 %vm448_vm1, %v3423_v8  ;;  %v3426_v12 = vld [vmem:[%s3869_s13 + $0x24] sm:$0xff]   ;;  %v3427_v13 = vld [vmem:[%s3869_s13 + $0x18] sm:$0xff]   ;;  %v3428_v14 = vld [vmem:[%s3869_s13 + $0x2c] sm:$0xff]  }
  0x1e   : > { %3256 = vmatpush3.bf16.msra.mxu1 %v948_v4  ;;  %3206 = vmatpush3.bf16.msra.mxu0 %v1429_v9  ;;  %v3429_v15 = vld [vmem:[%s3869_s13 + $0x20] sm:$0xff]   ;;  %v3430_v16 = vld [vmem:[%s3869_s13 + $0x34] sm:$0xff]   ;;  %v3431_v17 = vld [vmem:[%s3869_s13 + $0x28] sm:$0xff]   ;;  %p3688_p13 = pnand %p3687_p12, %p3834_p4  ;;  %p3695_p3 = por %p3694_p2, %p3693_p1 }
  0x1f   : > { %3111 = vmatprep.mubr.msk.bf16.mxu1 %vm448_vm1, %v3424_v10  ;;  %3161 = vmatprep.mubr.msk.bf16.mxu0 %vm448_vm1, %v3425_v11  ;;  %v3432_v18 = vld [vmem:[%s3869_s13 + $0x3c] sm:$0xff]   ;;  %v3433_v19 = vld [vmem:[%s3869_s13 + $0x30] sm:$0xff]   ;;  %v3434_v20 = vld [vmem:[%s3869_s13 + $0x44] sm:$0xff]  }
  0x20   : > { %v3435_v21 = vld [vmem:[%s3869_s13 + $0x38] sm:$0xff]   ;;  %v3436_v22 = vld [vmem:[%s3869_s13 + $0x4c] sm:$0xff]   ;;  %v3437_v23 = vld [vmem:[%s3869_s13 + $0x40] sm:$0xff]   ;;  %p3689_p0 = pneg %p3688_p13 }
  0x21   : > { %v3438_v24 = vld [vmem:[%s3869_s13 + $0x54] sm:$0xff]   ;;  %v3439_v25 = vld [vmem:[%s3869_s13 + $0x48] sm:$0xff]   ;;  %v3440_v26 = vld [vmem:[%s3869_s13 + $0x5c] sm:$0xff]  }
  0x22   : > { %v3441_v27 = vld [vmem:[%s3869_s13 + $0x50] sm:$0xff]   ;;  %v3442_v28 = vld [vmem:[%s3869_s13 + $0x64] sm:$0xff]   ;;  %v3443_v29 = vld [vmem:[%s3869_s13 + $0x58] sm:$0xff]   ;;  %p3696_p5 = pnand %p3695_p3, %p3689_p0 }
  0x23   : > { %v3444_v30 = vld [vmem:[%s3869_s13 + $0x6c] sm:$0xff]   ;;  %v3445_v31 = vld [vmem:[%s3869_s13 + $0x18] sm:$0xff]   ;;  %v3447_v33 = vld [vmem:[%s3869_s13 + $0x20] sm:$0xff]  }
  0x24   : > { %v3446_v32 = vld [vmem:[%s3869_s13 + $0x74] sm:$0xff]   ;;  %v3448_v34 = vld [vmem:[%s3869_s13 + $0x7c] sm:$0xff]   ;;  %v3449_v35 = vld [vmem:[%s3869_s13 + $0x28] sm:$0xff]  }
  0x25   : > { %3112 = vmatmul.mubr.msk.bf16.gmra.mrb[4].mxu1 %vm448_vm1, %v3426_v12  ;;  %3162 = vmatmul.mubr.msk.bf16.gmra.mrb[4].mxu0 %vm448_vm1, %v3427_v13  ;;  %v3450_v36 = vld [vmem:[%s3869_s13 + $0x84] sm:$0xff]   ;;  %v3451_v37 = vld [vmem:[%s3869_s13 + $0x30] sm:$0xff]   ;;  %v3453_v39 = vld [vmem:[%s3869_s13 + $0x38] sm:$0xff]  }
  0x26   : > { %3115 = vmatprep.mubr.msk.bf16.mxu1 %vm448_vm1, %v3428_v14  ;;  %3165 = vmatprep.mubr.msk.bf16.mxu0 %vm448_vm1, %v3429_v15  ;;  %v3452_v38 = vld [vmem:[%s3869_s13 + $0x8c] sm:$0xff]   ;;  %v3454_v40 = vld [vmem:[%s3869_s13 + $0x94] sm:$0xff]   ;;  %v3455_v41 = vld [vmem:[%s3869_s13 + $0x40] sm:$0xff]  }
  0x27   : > { %v3456_v42 = vld [vmem:[%s3869_s13 + $0x9c] sm:$0xff]   ;;  %v3457_v43 = vld [vmem:[%s3869_s13 + $0x48] sm:$0xff]   ;;  %v3459_v45 = vld [vmem:[%s3869_s13 + $0x50] sm:$0xff]  }
  0x28   : > { %v3458_v44 = vld [vmem:[%s3869_s13 + $0xa4] sm:$0xff]   ;;  %v3460_v46 = vld [vmem:[%s3869_s13 + $0xac] sm:$0xff]   ;;  %v3461_v47 = vld [vmem:[%s3869_s13 + $0x58] sm:$0xff]  }
  0x29   : > { %v3462_v48 = vld [vmem:[%s3869_s13 + $0xb4] sm:$0xff]   ;;  %v3463_v49 = vld [vmem:[%s3869_s13 + $0x60] sm:$0xff]   ;;  %v3465_v51 = vld [vmem:[%s3869_s13 + $0x68] sm:$0xff]  }
  0x2a   : > { %v3464_v50 = vld [vmem:[%s3869_s13 + $0xbc] sm:$0xff]   ;;  %v3466_v52 = vld [vmem:[%s3869_s13 + $0xc4] sm:$0xff]   ;;  %v3467_v53 = vld [vmem:[%s3869_s13 + $0x70] sm:$0xff]  }
  0x2b   : > { %v3468_v54 = vld [vmem:[%s3869_s13 + $0x60] sm:$0xff]   ;;  %v3469_v55 = vld [vmem:[%s3869_s13 + $0x78] sm:$0xff]   ;;  %v3470_v56 = vld [vmem:[%s3869_s13 + $0x68] sm:$0xff]  }
  0x2c   : > { %v3471_v57 = vld [vmem:[%s3869_s13 + $0x80] sm:$0xff]   ;;  %v3472_v58 = vld [vmem:[%s3869_s13 + $0x70] sm:$0xff]   ;;  %v3473_v59 = vld [vmem:[%s3869_s13 + $0x88] sm:$0xff]  }
  0x2d   : > { %3116 = vmatmul.mubr.msk.bf16.gmra.mrb[8].mxu1 %vm448_vm1, %v3430_v16  ;;  %3166 = vmatmul.mubr.msk.bf16.gmra.mrb[8].mxu0 %vm448_vm1, %v3431_v17  ;;  %v3474_v60 = vld [vmem:[%s3869_s13 + $0x78] sm:$0xff]   ;;  %v3475_v61 = vld [vmem:[%s3869_s13 + $0x90] sm:$0xff]   ;;  %v3476_v62 = vld [vmem:[%s3869_s13 + $0x80] sm:$0xff]  }
  0x2e   : > { %3119 = vmatprep.mubr.msk.bf16.mxu1 %vm448_vm1, %v3432_v18  ;;  %3169 = vmatprep.mubr.msk.bf16.mxu0 %vm448_vm1, %v3433_v19  ;;  %v3477_v63 = vld [vmem:[%s3869_s13 + $0x98] sm:$0xff]   ;;  %v3478_v0 = vld [vmem:[%s3869_s13 + $0x88] sm:$0xff]   ;;  %v3479_v1 = vld [vmem:[%s3869_s13 + $0xa0] sm:$0xff]  }
  0x2f   : > { %v3480_v2 = vld [vmem:[%s3869_s13 + $0x90] sm:$0xff]   ;;  %v3481_v3 = vld [vmem:[%s3869_s13 + $0xa8] sm:$0xff]   ;;  %v3482_v4 = vld [vmem:[%s3869_s13 + $0x98] sm:$0xff]  }
  0x30   : > { %v3483_v5 = vld [vmem:[%s3869_s13 + $0xb0] sm:$0xff]   ;;  %v3484_v6 = vld [vmem:[%s3869_s13 + $0xa0] sm:$0xff]   ;;  %v3485_v7 = vld [vmem:[%s3869_s13 + $0xb8] sm:$0xff]  }
  0x31   : > { %v3486_v8 = vld [vmem:[%s3869_s13 + $0xa8] sm:$0xff]   ;;  %v3487_v9 = vld [vmem:[%s3869_s13 + $0xc0] sm:$0xff]   ;;  %v3488_v10 = vld [vmem:[%s3869_s13 + $0xb0] sm:$0xff]  }
  0x32   : > { %v3489_v11 = vld [vmem:[%s3869_s13 + $0xc8] sm:$0xff]   ;;  %v3490_v12 = vld [vmem:[%s3869_s13 + $0xb8] sm:$0xff]   ;;  %v3491_v13 = vld [vmem:[%s3869_s13 + $0xd0] sm:$0xff]   ;;  %s4403_s13 = scalar_lea.hbm %s4461_s4, %s3359_s9 }
  0x35   : > { %3120 = vmatmul.mubr.msk.bf16.gmra.mrb[12].mxu1 %vm448_vm1, %v3434_v20  ;;  %3170 = vmatmul.mubr.msk.bf16.gmra.mrb[12].mxu0 %vm448_vm1, %v3435_v21 }
  0x36   : > { %3123 = vmatprep.mubr.msk.bf16.mxu1 %vm448_vm1, %v3436_v22  ;;  %3173 = vmatprep.mubr.msk.bf16.mxu0 %vm448_vm1, %v3437_v23 }
  0x3d   : > { %3124 = vmatmul.mubr.msk.bf16.gmra.mrb[16].mxu1 %vm448_vm1, %v3438_v24  ;;  %3174 = vmatmul.mubr.msk.bf16.gmra.mrb[16].mxu0 %vm448_vm1, %v3439_v25 }
  0x3e   : > { %3127 = vmatprep.mubr.msk.bf16.mxu1 %vm448_vm1, %v3440_v26  ;;  %3177 = vmatprep.mubr.msk.bf16.mxu0 %vm448_vm1, %v3441_v27 }
  0x45   : > { %3128 = vmatmul.mubr.msk.bf16.gmra.mrb[20].mxu1 %vm448_vm1, %v3442_v28  ;;  %3178 = vmatmul.mubr.msk.bf16.gmra.mrb[20].mxu0 %vm448_vm1, %v3443_v29 }
  0x46   : > { %3131 = vmatprep.mubr.msk.bf16.mxu1 %vm448_vm1, %v3444_v30  ;;  %3207 = vmatprep.mubr.msk.bf16.mxu0 %vm448_vm1, %v3445_v31 }
  0x4d   : > { %3132 = vmatmul.mubr.msk.bf16.gmra.mrb[24].mxu1 %vm448_vm1, %v3446_v32  ;;  %3208 = vmatmul.mubr.msk.bf16.vlgmr.msra.gmra.mrb[0].mxu0 %vm448_vm1, %v3447_v33 }
  0x4e   : > { %3135 = vmatprep.mubr.msk.bf16.mxu1 %vm448_vm1, %v3448_v34  ;;  %3211 = vmatprep.mubr.msk.bf16.mxu0 %vm448_vm1, %v3449_v35 }
  0x55   : > { %3136 = vmatmul.mubr.msk.bf16.gmra.mrb[28].mxu1 %vm448_vm1, %v3450_v36  ;;  %3212 = vmatmul.mubr.msk.bf16.gmra.mrb[4].mxu0 %vm448_vm1, %v3451_v37 }
  0x56   : > { %3139 = vmatprep.mubr.msk.bf16.mxu1 %vm448_vm1, %v3452_v38  ;;  %3215 = vmatprep.mubr.msk.bf16.mxu0 %vm448_vm1, %v3453_v39  ;;  %v4051_v39 = vld [vmem:[%s4458_s1] ss:$0 sm:$0xff] }
  0x5d   : > { %3140 = vmatmul.mubr.msk.bf16.gmra.mrb[32].mxu1 %vm448_vm1, %v3454_v40  ;;  %3216 = vmatmul.mubr.msk.bf16.gmra.mrb[8].mxu0 %vm448_vm1, %v3455_v41 }
  0x5e   : > { %3143 = vmatprep.mubr.msk.bf16.mxu1 %vm448_vm1, %v3456_v42  ;;  %3219 = vmatprep.mubr.msk.bf16.mxu0 %vm448_vm1, %v3457_v43  ;;  %v4056_v42 = vld [vmem:[%s4459_s2] ss:$0 sm:$0xff] }
  0x65   : > { %3144 = vmatmul.mubr.msk.bf16.gmra.mrb[36].mxu1 %vm448_vm1, %v3458_v44  ;;  %3220 = vmatmul.mubr.msk.bf16.gmra.mrb[12].mxu0 %vm448_vm1, %v3459_v45 }
  0x66   : > { %3147 = vmatprep.mubr.msk.bf16.mxu1 %vm448_vm1, %v3460_v46  ;;  %3223 = vmatprep.mubr.msk.bf16.mxu0 %vm448_vm1, %v3461_v47 }
  0x6d   : > { %3148 = vmatmul.mubr.msk.bf16.gmra.mrb[40].mxu1 %vm448_vm1, %v3462_v48  ;;  %3224 = vmatmul.mubr.msk.bf16.gmra.mrb[16].mxu0 %vm448_vm1, %v3463_v49 }
  0x6e   : > { %3151 = vmatprep.mubr.msk.bf16.mxu1 %vm448_vm1, %v3464_v50  ;;  %3227 = vmatprep.mubr.msk.bf16.mxu0 %vm448_vm1, %v3465_v51 }
  0x75   : > { %3152 = vmatmul.mubr.msk.bf16.gmra.mrb[44].mxu1 %vm448_vm1, %v3466_v52  ;;  %3228 = vmatmul.mubr.msk.bf16.gmra.mrb[20].mxu0 %vm448_vm1, %v3467_v53 }
  0x76   : > { %3181 = vmatprep.mubr.msk.bf16.mxu1 %vm448_vm1, %v3468_v54  ;;  %3231 = vmatprep.mubr.msk.bf16.mxu0 %vm448_vm1, %v3469_v55 }
  0x7d   : > { %3182 = vmatmul.mubr.msk.bf16.vlgmr.msra.gmra.mrb[24].mxu1 %vm448_vm1, %v3470_v56  ;;  %3232 = vmatmul.mubr.msk.bf16.gmra.mrb[24].mxu0 %vm448_vm1, %v3471_v57 }
  0x7e   : > { %3185 = vmatprep.mubr.msk.bf16.mxu1 %vm448_vm1, %v3472_v58  ;;  %3235 = vmatprep.mubr.msk.bf16.mxu0 %vm448_vm1, %v3473_v59 }
  0x85   : > { %3186 = vmatmul.mubr.msk.bf16.gmra.mrb[28].mxu1 %vm448_vm1, %v3474_v60  ;;  %3236 = vmatmul.mubr.msk.bf16.gmra.mrb[28].mxu0 %vm448_vm1, %v3475_v61 }
  0x86   : > { %3189 = vmatprep.mubr.msk.bf16.mxu1 %vm448_vm1, %v3476_v62  ;;  %3239 = vmatprep.mubr.msk.bf16.mxu0 %vm448_vm1, %v3477_v63 }
  0x8d   : > { %3190 = vmatmul.mubr.msk.bf16.gmra.mrb[32].mxu1 %vm448_vm1, %v3478_v0  ;;  %3240 = vmatmul.mubr.msk.bf16.gmra.mrb[32].mxu0 %vm448_vm1, %v3479_v1 }
  0x8e   : > { %3193 = vmatprep.mubr.msk.bf16.mxu1 %vm448_vm1, %v3480_v2  ;;  %3243 = vmatprep.mubr.msk.bf16.mxu0 %vm448_vm1, %v3481_v3 }
  0x95   : > { %3194 = vmatmul.mubr.msk.bf16.gmra.mrb[36].mxu1 %vm448_vm1, %v3482_v4  ;;  %3244 = vmatmul.mubr.msk.bf16.gmra.mrb[36].mxu0 %vm448_vm1, %v3483_v5 }
  0x96   : > { %3197 = vmatprep.mubr.msk.bf16.mxu1 %vm448_vm1, %v3484_v6  ;;  %3247 = vmatprep.mubr.msk.bf16.mxu0 %vm448_vm1, %v3485_v7 }
  0x9d   : > { %3198 = vmatmul.mubr.msk.bf16.gmra.mrb[40].mxu1 %vm448_vm1, %v3486_v8  ;;  %3248 = vmatmul.mubr.msk.bf16.gmra.mrb[40].mxu0 %vm448_vm1, %v3487_v9 }
  0x9e   : > { %3201 = vmatprep.mubr.msk.bf16.mxu1 %vm448_vm1, %v3488_v10  ;;  %3251 = vmatprep.mubr.msk.bf16.mxu0 %vm448_vm1, %v3489_v11 }
  0xa5   : > { %3202 = vmatmul.mubr.msk.bf16.gmra.mrb[44].mxu1 %vm448_vm1, %v3490_v12  ;;  %3252 = vmatmul.mubr.msk.bf16.gmra.mrb[44].mxu0 %vm448_vm1, %v3491_v13 }
  0xf0   : > { %v3109_v14 = vpop.f32.mrb[0].mxu1 }
  0xf1   : > { %v559_v15 = vpop.f32.mrb[1].mxu1 }
  0xf2   : > { %v3110_v16 = vpop.f32.mrb[2].mxu1 }
  0xf3   : > { %v562_v17 = vpop.f32.mrb[3].mxu1 }
  0xf8   : > { %v3113_v18 = vpop.f32.mrb[4].mxu1 }
  0xf9   : > { %v575_v19 = vpop.f32.mrb[5].mxu1 }
  0xfa   : > { %v3114_v20 = vpop.f32.mrb[6].mxu1 }
  0xfb   : > { %v578_v21 = vpop.f32.mrb[7].mxu1 }
 0x100   : > { %v4016_v22 = vpop.f32.mrb[8].mxu1 }
 0x101   : > { %v4018_v23 = vpop.f32.mrb[9].mxu1 }
 0x102   : > { %v4020_v24 = vpop.f32.mrb[10].mxu1 }
 0x103   : > { %v4022_v25 = vpop.f32.mrb[11].mxu1 }
 0x108   : > { %v4024_v26 = vpop.f32.mrb[12].mxu1 }
 0x109   : > { %v4026_v27 = vpop.f32.mrb[13].mxu1 }
 0x10a   : > { %v4028_v28 = vpop.f32.mrb[14].mxu1 }
 0x10b   : > { %v4030_v29 = vpop.f32.mrb[15].mxu1 }
 0x110   : > { %v4032_v30 = vpop.f32.mrb[16].mxu1 }
 0x111   : > { %v4034_v31 = vpop.f32.mrb[17].mxu1 }
 0x112   : > { %v4036_v32 = vpop.f32.mrb[18].mxu1 }
 0x113   : > { %v4038_v33 = vpop.f32.mrb[19].mxu1 }
 0x118   : > { %v4040_v34 = vpop.f32.mrb[20].mxu1 }
 0x119   : > { %v4042_v35 = vpop.f32.mrb[21].mxu1 }
 0x11a   : > { %v4044_v36 = vpop.f32.mrb[22].mxu1 }
 0x11b   : > { %v4046_v37 = vpop.f32.mrb[23].mxu1 }
 0x120   : > { %v3209_v38 = vpop.f32.mrb[0].mxu0 }
 0x121   : > { %v3257_v40 = vadd.f32 %v3209_v38, %v3109_v14  ;;  %v1465_v41 = vpop.f32.mrb[1].mxu0 }
 0x122   : > { %v3258_v43 = vadd.f32 %v1465_v41, %v559_v15  ;;  %v3210_v44 = vpop.f32.mrb[2].mxu0 }
 0x123   : > { %v1713_v45 = vmul.f32 %v3257_v40, %v4051_v39  ;;  %v3259_v46 = vadd.f32 %v3210_v44, %v3110_v16  ;;  %v1468_v47 = vpop.f32.mrb[3].mxu0 }
 0x124   : > { %v1711_v48 = vmul.f32 %v3258_v43, %v4051_v39  ;;  %v3260_v49 = vadd.f32 %v1468_v47, %v562_v17 }
 0x125   : > { %v4061_v50 = vadd.f32 %v4056_v42, %v1713_v45  ;;  %v1714_v51 = vmul.f32 %v3259_v46, %v4051_v39 }
 0x126   : > { %v4065_v52 = vadd.f32 %v4056_v42, %v1711_v48  ;;  %v1712_v53 = vmul.f32 %v3260_v49, %v4051_v39 }
 0x127   : > { %v2742_v54 = vmul.f32 -1.442695, %v4061_v50  ;;  %v4070_v55 = vadd.f32 %v4056_v42, %v1714_v51 }
 0x128   : > { %v2740_v56 = vmul.f32 -1.442695, %v4065_v52  ;;  %v4074_v57 = vadd.f32 %v4056_v42, %v1712_v53  ;;  %v3213_v58 = vpop.f32.mrb[4].mxu0 }
 0x129   : > { %3492 = vpow2.f32 %v2742_v54  ;;  %v2743_v59 = vmul.f32 -1.442695, %v4070_v55  ;;  %v3261_v60 = vadd.f32 %v3213_v58, %v3113_v18  ;;  %v1481_v61 = vpop.f32.mrb[5].mxu0 }
 0x12a   : > { %3494 = vpow2.f32 %v2740_v56  ;;  %v2741_v62 = vmul.f32 -1.442695, %v4074_v57  ;;  %v3262_v63 = vadd.f32 %v1481_v61, %v575_v19  ;;  %v3214_v0 = vpop.f32.mrb[6].mxu0 }
 0x12b   : > { %3496 = vpow2.f32 %v2743_v59  ;;  %v1717_v1 = vmul.f32 %v3261_v60, %v4051_v39  ;;  %v3263_v2 = vadd.f32 %v3214_v0, %v3114_v20  ;;  %v1484_v3 = vpop.f32.mrb[7].mxu0 }
 0x12c   : > { %3498 = vpow2.f32 %v2741_v62  ;;  %v1715_v4 = vmul.f32 %v3262_v63, %v4051_v39  ;;  %v3264_v5 = vadd.f32 %v1484_v3, %v578_v21 }
 0x12d   : > { %v4081_v6 = vadd.f32 %v4056_v42, %v1717_v1  ;;  %v1718_v7 = vmul.f32 %v3263_v2, %v4051_v39 }
 0x12e   : > { %v4085_v8 = vadd.f32 %v4056_v42, %v1715_v4  ;;  %v1716_v9 = vmul.f32 %v3264_v5, %v4051_v39 }
 0x12f   : > { %v2746_v10 = vmul.f32 -1.442695, %v4081_v6  ;;  %v4090_v11 = vadd.f32 %v4056_v42, %v1718_v7 }
 0x130   : > { %v2744_v12 = vmul.f32 -1.442695, %v4085_v8  ;;  %v4094_v13 = vadd.f32 %v4056_v42, %v1716_v9  ;;  %v3217_v14 = vpop.f32.mrb[8].mxu0 }
 0x131   : > { %3500 = vpow2.f32 %v2746_v10  ;;  %v2747_v15 = vmul.f32 -1.442695, %v4090_v11  ;;  %v3265_v16 = vadd.f32 %v3217_v14, %v4016_v22  ;;  %v1497_v17 = vpop.f32.mrb[9].mxu0 }
 0x132   : > { %3502 = vpow2.f32 %v2744_v12  ;;  %v2745_v18 = vmul.f32 -1.442695, %v4094_v13  ;;  %v3266_v19 = vadd.f32 %v1497_v17, %v4018_v23  ;;  %v3218_v20 = vpop.f32.mrb[10].mxu0 }
 0x133   : > { %v3493_v21 = vpop.eup %3492  ;;  %3504 = vpow2.f32 %v2747_v15  ;;  %v1721_v38 = vmul.f32 %v3265_v16, %v4051_v39  ;;  %v3267_v40 = vadd.f32 %v3218_v20, %v4020_v24  ;;  %v1500_v41 = vpop.f32.mrb[11].mxu0 }
 0x134   : > { %v3495_v43 = vpop.eup %3494  ;;  %v1960_v44 = vadd.f32 1.0, %v3493_v21  ;;  %3506 = vpow2.f32 %v2745_v18  ;;  %v1719_v45 = vmul.f32 %v3266_v19, %v4051_v39  ;;  %v3268_v22 = vadd.f32 %v1500_v41, %v4022_v25 }
 0x135   : > { %v3497_v46 = vpop.eup %3496  ;;  %v1958_v47 = vadd.f32 1.0, %v3495_v43  ;;  %v4105_v48 = vadd.f32 %v4056_v42, %v1721_v38  ;;  %v1722_v23 = vmul.f32 %v3267_v40, %v4051_v39 }
 0x136   : > { %v3499_v49 = vpop.eup %3498  ;;  %3508 = vrcp.f32 %v1960_v44  ;;  %v1961_v51 = vadd.f32 1.0, %v3497_v46  ;;  %v4109_v24 = vadd.f32 %v4056_v42, %v1719_v45  ;;  %v1720_v53 = vmul.f32 %v3268_v22, %v4051_v39 }
 0x137   : > { %3510 = vrcp.f32 %v1958_v47  ;;  %v1959_v54 = vadd.f32 1.0, %v3499_v49  ;;  %v2750_v56 = vmul.f32 -1.442695, %v4105_v48  ;;  %v4114_v25 = vadd.f32 %v4056_v42, %v1722_v23 }
 0x138   : > { %3512 = vrcp.f32 %v1961_v51  ;;  %v2748_v58 = vmul.f32 -1.442695, %v4109_v24  ;;  %v4118_v59 = vadd.f32 %v4056_v42, %v1720_v53  ;;  %v3221_v60 = vpop.f32.mrb[12].mxu0 }
 0x139   : > { %3514 = vrcp.f32 %v1959_v54  ;;  %v2751_v61 = vmul.f32 -1.442695, %v4114_v25  ;;  %v3269_v62 = vadd.f32 %v3221_v60, %v4024_v26  ;;  %v1513_v63 = vpop.f32.mrb[13].mxu0 }
 0x13a   : > { %3516 = vpow2.f32 %v2750_v56  ;;  %v2749_v0 = vmul.f32 -1.442695, %v4118_v59  ;;  %v3270_v1 = vadd.f32 %v1513_v63, %v4026_v27  ;;  %v3222_v2 = vpop.f32.mrb[14].mxu0 }
 0x13b   : > { %v3501_v3 = vpop.eup %3500  ;;  %3518 = vpow2.f32 %v2748_v58  ;;  %v1725_v4 = vmul.f32 %v3269_v62, %v4051_v39  ;;  %v3271_v5 = vadd.f32 %v3222_v2, %v4028_v28  ;;  %v1516_v7 = vpop.f32.mrb[15].mxu0 }
 0x13c   : > { %v3503_v9 = vpop.eup %3502  ;;  %v1964_v10 = vadd.f32 1.0, %v3501_v3  ;;  %3520 = vpow2.f32 %v2751_v61  ;;  %v1723_v26 = vmul.f32 %v3270_v1, %v4051_v39  ;;  %v3272_v12 = vadd.f32 %v1516_v7, %v4030_v29 }
 0x13d   : > { %v3505_v14 = vpop.eup %3504  ;;  %v1962_v15 = vadd.f32 1.0, %v3503_v9  ;;  %3522 = vpow2.f32 %v2749_v0  ;;  %v4130_v27 = vadd.f32 %v4056_v42, %v1725_v4  ;;  %v1726_v16 = vmul.f32 %v3271_v5, %v4051_v39 }
 0x13e   : > { %v3507_v17 = vpop.eup %3506  ;;  %3524 = vrcp.f32 %v1964_v10  ;;  %v1965_v28 = vadd.f32 1.0, %v3505_v14  ;;  %v4134_v18 = vadd.f32 %v4056_v42, %v1723_v26  ;;  %v1724_v19 = vmul.f32 %v3272_v12, %v4051_v39 }
 0x13f   : > { %3526 = vrcp.f32 %v1962_v15  ;;  %v1963_v29 = vadd.f32 1.0, %v3507_v17  ;;  %v2754_v20 = vmul.f32 -1.442695, %v4130_v27  ;;  %v4139_v21 = vadd.f32 %v4056_v42, %v1726_v16 }
 0x140   : > { %v3509_v38 = vpop.eup %3508  ;;  %3528 = vrcp.f32 %v1965_v28  ;;  %v2752_v40 = vmul.f32 -1.442695, %v4134_v18  ;;  %v4147_v41 = vadd.f32 %v4056_v42, %v1724_v19  ;;  %v3225_v43 = vpop.f32.mrb[16].mxu0 }
 0x141   : > { %v3511_v44 = vpop.eup %3510  ;;  %v2104_v45 = vmul.f32 %v3509_v38, %v4061_v50  ;;  %3530 = vrcp.f32 %v1963_v29  ;;  %v2755_v22 = vmul.f32 -1.442695, %v4139_v21  ;;  %v3273_v46 = vadd.f32 %v3225_v43, %v4032_v30  ;;  %v1529_v47 = vpop.f32.mrb[17].mxu0 }
 0x142   : > { %v3513_v23 = vpop.eup %3512  ;;  %v2102_v49 = vmul.f32 %v3511_v44, %v4065_v52  ;;  %3532 = vpow2.f32 %v2754_v20  ;;  %v2753_v51 = vmul.f32 -1.442695, %v4147_v41  ;;  %v3274_v53 = vadd.f32 %v1529_v47, %v4034_v31  ;;  %v3226_v54 = vpop.f32.mrb[18].mxu0 }
 0x143   : > { %v3515_v56 = vpop.eup %3514  ;;  %v2105_v58 = vmul.f32 %v3513_v23, %v4070_v55  ;;  %3534 = vpow2.f32 %v2752_v40  ;;  %v1729_v50 = vmul.f32 %v3273_v46, %v4051_v39  ;;  %v3275_v60 = vadd.f32 %v3226_v54, %v4036_v32  ;;  %v1532_v61 = vpop.f32.mrb[19].mxu0 }
 0x144   : > { %v3517_v30 = vpop.eup %3516  ;;  %v2103_v62 = vmul.f32 %v3515_v56, %v4074_v57  ;;  %3536 = vpow2.f32 %v2755_v22  ;;  %v1727_v52 = vmul.f32 %v3274_v53, %v4051_v39  ;;  %v3276_v63 = vadd.f32 %v1532_v61, %v4038_v33 }
 0x145   : > { %v3519_v31 = vpop.eup %3518  ;;  %v2895_v0 = vpack.c.bf16 %v2105_v58, %v2104_v45  ;;  %v1968_v1 = vadd.f32 1.0, %v3517_v30  ;;  %3538 = vpow2.f32 %v2753_v51  ;;  %v4162_v55 = vadd.f32 %v4056_v42, %v1729_v50 }
 0x146   : > { %v3521_v2 = vpop.eup %3520  ;;  %v2890_v3 = vpack.c.bf16 %v2103_v62, %v2102_v49  ;;  %v1966_v32 = vadd.f32 1.0, %v3519_v31  ;;  %v4165_v4 = vadd.f32 %v4056_v42, %v1727_v52  ;;  %v1730_v57 = vmul.f32 %v3275_v60, %v4051_v39 }
 0x147   : > { %v3523_v5 = vpop.eup %3522  ;;  %3007 = vst [vmem:[%s4169_s30 + $0x8] sm:$0xff] %v2895_v0   ;;  %3540 = vrcp.f32 %v1968_v1  ;;  %v1969_v33 = vadd.f32 1.0, %v3521_v2  ;;  %v2758_v7 = vmul.f32 -1.442695, %v4162_v55  ;;  %v1728_v9 = vmul.f32 %v3276_v63, %v4051_v39 }
 0x148   : > { %v3525_v10 = vpop.eup %3524  ;;  %2891 = vst [vmem:[%s4169_s30] sm:$0xff] %v2890_v3   ;;  %3542 = vrcp.f32 %v1966_v32  ;;  %v1967_v26 = vadd.f32 1.0, %v3523_v5  ;;  %v2756_v12 = vmul.f32 -1.442695, %v4165_v4  ;;  %v4177_v14 = vadd.f32 %v4056_v42, %v1730_v57  ;;  %v3229_v15 = vpop.f32.mrb[20].mxu0 }
 0x149   : > { %v3527_v16 = vpop.eup %3526  ;;  %v2108_v17 = vmul.f32 %v3525_v10, %v4081_v6  ;;  %3544 = vrcp.f32 %v1969_v33  ;;  %v4181_v28 = vadd.f32 %v4056_v42, %v1728_v9  ;;  %v3277_v19 = vadd.f32 %v3229_v15, %v4040_v34  ;;  %v1545_v29 = vpop.f32.mrb[21].mxu0 }
 0x14a   : > { %v3529_v20 = vpop.eup %3528  ;;  %v2106_v38 = vmul.f32 %v3527_v16, %v4085_v8  ;;  %3546 = vrcp.f32 %v1967_v26  ;;  %v2759_v40 = vmul.f32 -1.442695, %v4177_v14  ;;  %v3278_v43 = vadd.f32 %v1545_v29, %v4042_v35  ;;  %v3230_v44 = vpop.f32.mrb[22].mxu0 }
 0x14b   : > { %v3531_v45 = vpop.eup %3530  ;;  %v2109_v22 = vmul.f32 %v3529_v20, %v4090_v11  ;;  %3548 = vpow2.f32 %v2758_v7  ;;  %v2757_v6 = vmul.f32 -1.442695, %v4181_v28  ;;  %v1733_v46 = vmul.f32 %v3277_v19, %v4051_v39  ;;  %v1548_v47 = vpop.f32.mrb[23].mxu0 }
 0x14c   : > { %v3533_v34 = vpop.eup %3532  ;;  %v2107_v23 = vmul.f32 %v3531_v45, %v4094_v13  ;;  %3550 = vpow2.f32 %v2756_v12  ;;  %v1731_v8 = vmul.f32 %v3278_v43, %v4051_v39  ;;  %v3279_v49 = vadd.f32 %v3230_v44, %v4044_v36 }
 0x14d   : > { %v3535_v35 = vpop.eup %3534  ;;  %v2905_v51 = vpack.c.bf16 %v2109_v22, %v2108_v17  ;;  %v1972_v53 = vadd.f32 1.0, %v3533_v34  ;;  %3552 = vpow2.f32 %v2759_v40  ;;  %v4194_v11 = vadd.f32 %v4056_v42, %v1733_v46 }
 0x14e   : > { %v3537_v54 = vpop.eup %3536  ;;  %v2900_v56 = vpack.c.bf16 %v2107_v23, %v2106_v38  ;;  %v1970_v58 = vadd.f32 1.0, %v3535_v35  ;;  %3554 = vpow2.f32 %v2757_v6  ;;  %v4197_v50 = vadd.f32 %v4056_v42, %v1731_v8 }
 0x14f   : > { %v3539_v13 = vpop.eup %3538  ;;  %3009 = vst [vmem:[%s4169_s30 + $0x18] sm:$0xff] %v2905_v51   ;;  %3556 = vrcp.f32 %v1972_v53  ;;  %v1973_v60 = vadd.f32 1.0, %v3537_v54  ;;  %v2762_v36 = vmul.f32 -1.442695, %v4194_v11  ;;  %v1734_v61 = vmul.f32 %v3279_v49, %v4051_v39 }
 0x150   : > { %v3183_v30 = vpop.f32.mrb[24].mxu1  ;;  %3008 = vst [vmem:[%s4169_s30 + $0x10] sm:$0xff] %v2900_v56   ;;  %3558 = vrcp.f32 %v1970_v58  ;;  %v1971_v62 = vadd.f32 1.0, %v3539_v13  ;;  %v2760_v52 = vmul.f32 -1.442695, %v4197_v50  ;;  %v3280_v63 = vadd.f32 %v1548_v47, %v4046_v37  ;;  %v3233_v31 = vpop.f32.mrb[24].mxu0 }
 0x151   : > { %v1080_v0 = vpop.f32.mrb[25].mxu1  ;;  %v3541_v1 = vpop.eup %3540  ;;  %3560 = vrcp.f32 %v1973_v60  ;;  %v4206_v2 = vadd.f32 %v4056_v42, %v1734_v61  ;;  %v3281_v3 = vadd.f32 %v3233_v31, %v3183_v30 }
 0x152   : > { %v1561_v32 = vpop.f32.mrb[25].mxu0  ;;  %v3184_v57 = vpop.f32.mrb[26].mxu1  ;;  %v2112_v33 = vmul.f32 %v3541_v1, %v4105_v48  ;;  %3562 = vrcp.f32 %v1971_v62  ;;  %v1732_v7 = vmul.f32 %v3280_v63, %v4051_v39 }
 0x153   : > { %v3543_v5 = vpop.eup %3542  ;;  %v3282_v9 = vadd.f32 %v1561_v32, %v1080_v0  ;;  %v3234_v10 = vpop.f32.mrb[26].mxu0  ;;  %3564 = vpow2.f32 %v2762_v36  ;;  %v2763_v15 = vmul.f32 -1.442695, %v4206_v2  ;;  %v1737_v16 = vmul.f32 %v3281_v3, %v4051_v39 }
 0x154   : > { %v1083_v26 = vpop.f32.mrb[27].mxu1  ;;  %v3545_v37 = vpop.eup %3544  ;;  %v2110_v12 = vmul.f32 %v3543_v5, %v4109_v24  ;;  %3566 = vpow2.f32 %v2760_v52  ;;  %v4215_v48 = vadd.f32 %v4056_v42, %v1732_v7  ;;  %v3283_v43 = vadd.f32 %v3234_v10, %v3184_v57 }
 0x155   : > { %v1564_v17 = vpop.f32.mrb[27].mxu0  ;;  %v3547_v19 = vpop.eup %3546  ;;  %v2113_v29 = vmul.f32 %v3545_v37, %v4114_v25  ;;  %v1735_v20 = vmul.f32 %v3282_v9, %v4051_v39  ;;  %3568 = vpow2.f32 %v2763_v15  ;;  %v4220_v24 = vadd.f32 %v4056_v42, %v1737_v16 }
 0x156   : > { %v3549_v38 = vpop.eup %3548  ;;  %v2111_v40 = vmul.f32 %v3547_v19, %v4118_v59  ;;  %v2761_v25 = vmul.f32 -1.442695, %v4215_v48  ;;  %v1738_v23 = vmul.f32 %v3283_v43, %v4051_v39  ;;  %v3284_v53 = vadd.f32 %v1564_v17, %v1083_v26 }
 0x157   : > { %v3551_v44 = vpop.eup %3550  ;;  %v2915_v45 = vpack.c.bf16 %v2113_v29, %v2112_v33  ;;  %v1976_v22 = vadd.f32 1.0, %v3549_v38  ;;  %v4224_v6 = vadd.f32 %v4056_v42, %v1735_v20  ;;  %v2766_v59 = vmul.f32 -1.442695, %v4220_v24 }
 0x158   : > { %v3553_v46 = vpop.eup %3552  ;;  %v2910_v47 = vpack.c.bf16 %v2111_v40, %v2110_v12  ;;  %v1974_v34 = vadd.f32 1.0, %v3551_v44  ;;  %v3187_v8 = vpop.f32.mrb[28].mxu1  ;;  %v4232_v60 = vadd.f32 %v4056_v42, %v1738_v23  ;;  %v1736_v63 = vmul.f32 %v3284_v53, %v4051_v39 }
 0x159   : > { %v3555_v49 = vpop.eup %3554  ;;  %3011 = vst [vmem:[%s4169_s30 + $0x28] sm:$0xff] %v2915_v45   ;;  %3570 = vrcp.f32 %v1976_v22  ;;  %v1977_v35 = vadd.f32 1.0, %v3553_v46  ;;  %v2764_v51 = vmul.f32 -1.442695, %v4224_v6  ;;  %v3237_v54 = vpop.f32.mrb[28].mxu0 }
 0x15a   : > { %v1096_v56 = vpop.f32.mrb[29].mxu1  ;;  %v3557_v58 = vpop.eup %3556  ;;  %3010 = vst [vmem:[%s4169_s30 + $0x20] sm:$0xff] %v2910_v47   ;;  %3572 = vrcp.f32 %v1974_v34  ;;  %v1975_v13 = vadd.f32 1.0, %v3555_v49  ;;  %v3285_v36 = vadd.f32 %v3237_v54, %v3187_v8  ;;  %v2767_v57 = vmul.f32 -1.442695, %v4232_v60 }
 0x15b   : > { %v1577_v61 = vpop.f32.mrb[29].mxu0  ;;  %v3188_v30 = vpop.f32.mrb[30].mxu1  ;;  %v2116_v52 = vmul.f32 %v3557_v58, %v4130_v27  ;;  %3574 = vrcp.f32 %v1977_v35  ;;  %v4241_v27 = vadd.f32 %v4056_v42, %v1736_v63 }
 0x15c   : > { %v3559_v62 = vpop.eup %3558  ;;  %v3286_v31 = vadd.f32 %v1577_v61, %v1096_v56  ;;  %v3238_v0 = vpop.f32.mrb[30].mxu0  ;;  %3576 = vrcp.f32 %v1975_v13  ;;  %v1741_v5 = vmul.f32 %v3285_v36, %v4051_v39 }
 0x15d   : > { %v1099_v1 = vpop.f32.mrb[31].mxu1  ;;  %v3561_v3 = vpop.eup %3560  ;;  %v2114_v32 = vmul.f32 %v3559_v62, %v4134_v18  ;;  %3578 = vpow2.f32 %v2761_v25  ;;  %v3287_v12 = vadd.f32 %v3238_v0, %v3188_v30 }
 0x15e   : > { %v1580_v33 = vpop.f32.mrb[31].mxu0  ;;  %v3563_v7 = vpop.eup %3562  ;;  %v2117_v9 = vmul.f32 %v3561_v3, %v4139_v21  ;;  %v1739_v10 = vmul.f32 %v3286_v31, %v4051_v39  ;;  %3580 = vpow2.f32 %v2766_v59  ;;  %v4246_v18 = vadd.f32 %v4056_v42, %v1741_v5 }
 0x15f   : > { %v3565_v26 = vpop.eup %3564  ;;  %v2115_v37 = vmul.f32 %v3563_v7, %v4147_v41  ;;  %3582 = vpow2.f32 %v2764_v51  ;;  %v2765_v21 = vmul.f32 -1.442695, %v4241_v27  ;;  %v1742_v44 = vmul.f32 %v3287_v12, %v4051_v39 }
 0x160   : > { %v3567_v15 = vpop.eup %3566  ;;  %v2925_v16 = vpack.c.bf16 %v2117_v9, %v2116_v52  ;;  %v1980_v17 = vadd.f32 1.0, %v3565_v26  ;;  %3584 = vpow2.f32 %v2767_v57  ;;  %v2770_v38 = vmul.f32 -1.442695, %v4246_v18  ;;  %v3191_v40 = vpop.f32.mrb[32].mxu1 }
 0x161   : > { %v3569_v19 = vpop.eup %3568  ;;  %v2920_v29 = vpack.c.bf16 %v2115_v37, %v2114_v32  ;;  %v1978_v20 = vadd.f32 1.0, %v3567_v15  ;;  %v4252_v43 = vadd.f32 %v4056_v42, %v1739_v10  ;;  %v3241_v45 = vpop.f32.mrb[32].mxu0  ;;  %v3288_v25 = vadd.f32 %v1580_v33, %v1099_v1 }
 0x162   : > { %3013 = vst [vmem:[%s4169_s30 + $0x38] sm:$0xff] %v2925_v16   ;;  %3586 = vrcp.f32 %v1980_v17  ;;  %v1981_v41 = vadd.f32 1.0, %v3569_v19  ;;  %v1112_v22 = vpop.f32.mrb[33].mxu1  ;;  %v3289_v46 = vadd.f32 %v3241_v45, %v3191_v40  ;;  %v1593_v47 = vpop.f32.mrb[33].mxu0  ;;  %v4258_v8 = vadd.f32 %v4056_v42, %v1742_v44 }
 0x163   : > { %3012 = vst [vmem:[%s4169_s30 + $0x30] sm:$0xff] %v2920_v29   ;;  %3588 = vrcp.f32 %v1978_v20  ;;  %v3192_v34 = vpop.f32.mrb[34].mxu1  ;;  %v3571_v59 = vpop.eup %3570  ;;  %v2768_v23 = vmul.f32 -1.442695, %v4252_v43  ;;  %v3290_v49 = vadd.f32 %v1593_v47, %v1112_v22  ;;  %v1740_v56 = vmul.f32 %v3288_v25, %v4051_v39 }
 0x164   : > { %3590 = vrcp.f32 %v1981_v41  ;;  %v3242_v35 = vpop.f32.mrb[34].mxu0  ;;  %v1115_v51 = vpop.f32.mrb[35].mxu1  ;;  %v2120_v54 = vmul.f32 %v3571_v59, %v4162_v55  ;;  %v1745_v58 = vmul.f32 %v3289_v46, %v4051_v39  ;;  %v2771_v30 = vmul.f32 -1.442695, %v4258_v8 }
 0x165   : > { %v3573_v53 = vpop.eup %3572  ;;  %3592 = vpow2.f32 %v2765_v21  ;;  %v1596_v13 = vpop.f32.mrb[35].mxu0  ;;  %v1743_v62 = vmul.f32 %v3290_v49, %v4051_v39  ;;  %v4268_v55 = vadd.f32 %v4056_v42, %v1740_v56  ;;  %v3291_v3 = vadd.f32 %v3242_v35, %v3192_v34 }
 0x166   : > { %v3575_v36 = vpop.eup %3574  ;;  %v2118_v61 = vmul.f32 %v3573_v53, %v4165_v4  ;;  %3594 = vpow2.f32 %v2770_v38  ;;  %v4271_v31 = vadd.f32 %v4056_v42, %v1745_v58  ;;  %v3292_v17 = vadd.f32 %v1596_v13, %v1115_v51 }
 0x167   : > { %v3577_v52 = vpop.eup %3576  ;;  %v2121_v63 = vmul.f32 %v3575_v36, %v4177_v14  ;;  %3596 = vpow2.f32 %v2768_v23  ;;  %v4275_v4 = vadd.f32 %v4056_v42, %v1743_v62  ;;  %v2769_v14 = vmul.f32 -1.442695, %v4268_v55 }
 0x168   : > { %v3579_v0 = vpop.eup %3578  ;;  %v2119_v1 = vmul.f32 %v3577_v52, %v4181_v28  ;;  %3598 = vpow2.f32 %v2771_v30  ;;  %v3195_v33 = vpop.f32.mrb[36].mxu1  ;;  %v2774_v26 = vmul.f32 -1.442695, %v4271_v31  ;;  %v1746_v28 = vmul.f32 %v3291_v3, %v4051_v39 }
 0x169   : > { %v3581_v32 = vpop.eup %3580  ;;  %v2935_v57 = vpack.c.bf16 %v2121_v63, %v2120_v54  ;;  %v1979_v5 = vadd.f32 1.0, %v3579_v0  ;;  %v3245_v37 = vpop.f32.mrb[36].mxu0  ;;  %v2772_v40 = vmul.f32 -1.442695, %v4275_v4  ;;  %v1744_v46 = vmul.f32 %v3292_v17, %v4051_v39 }
 0x16a   : > { %v3583_v7 = vpop.eup %3582  ;;  %v2930_v9 = vpack.c.bf16 %v2119_v1, %v2118_v61  ;;  %v1984_v10 = vadd.f32 1.0, %v3581_v32  ;;  %v1128_v12 = vpop.f32.mrb[37].mxu1  ;;  %v3293_v21 = vadd.f32 %v3245_v37, %v3195_v33  ;;  %v4284_v25 = vadd.f32 %v4056_v42, %v1746_v28 }
 0x16b   : > { %v3585_v15 = vpop.eup %3584  ;;  %3015 = vst [vmem:[%s4169_s30 + $0x48] sm:$0xff] %v2935_v57   ;;  %3600 = vrcp.f32 %v1979_v5  ;;  %v1982_v16 = vadd.f32 1.0, %v3583_v7  ;;  %v1609_v19 = vpop.f32.mrb[37].mxu0  ;;  %v4295_v54 = vadd.f32 %v4056_v42, %v1744_v46 }
 0x16c   : > { %v3196_v29 = vpop.f32.mrb[38].mxu1  ;;  %v3587_v20 = vpop.eup %3586  ;;  %3014 = vst [vmem:[%s4169_s30 + $0x40] sm:$0xff] %v2930_v9   ;;  %3602 = vrcp.f32 %v1984_v10  ;;  %v1985_v38 = vadd.f32 1.0, %v3585_v15  ;;  %v3294_v41 = vadd.f32 %v1609_v19, %v1128_v12  ;;  %v1749_v47 = vmul.f32 %v3293_v21, %v4051_v39 }
 0x16d   : > { %v3246_v44 = vpop.f32.mrb[38].mxu0  ;;  %v1131_v45 = vpop.f32.mrb[39].mxu1  ;;  %3604 = vrcp.f32 %v1982_v16  ;;  %v2124_v23 = vmul.f32 %v3587_v20, %v4194_v11  ;;  %v2773_v0 = vmul.f32 -1.442695, %v4295_v54 }
 0x16e   : > { %v3589_v22 = vpop.eup %3588  ;;  %v1612_v34 = vpop.f32.mrb[39].mxu0  ;;  %3606 = vrcp.f32 %v1985_v38  ;;  %v1747_v35 = vmul.f32 %v3294_v41, %v4051_v39  ;;  %v4298_v56 = vadd.f32 %v4056_v42, %v1749_v47 }
 0x16f   : > { %v3591_v59 = vpop.eup %3590  ;;  %v4290_v49 = vmul.f32 %v3589_v22, %v4197_v50  ;;  %3608 = vpow2.f32 %v2769_v14  ;;  %v3295_v50 = vadd.f32 %v3246_v44, %v3196_v29  ;;  %v3296_v5 = vadd.f32 %v1612_v34, %v1131_v45 }
 0x170   : > { %v3593_v51 = vpop.eup %3592  ;;  %v2125_v53 = vmul.f32 %v3591_v59, %v4206_v2  ;;  %3610 = vpow2.f32 %v2774_v26  ;;  %v4301_v11 = vadd.f32 %v4056_v42, %v1747_v35  ;;  %v2775_v2 = vmul.f32 -1.442695, %v4284_v25  ;;  %v3199_v62 = vpop.f32.mrb[40].mxu1 }
 0x171   : > { %v3595_v58 = vpop.eup %3594  ;;  %v1983_v13 = vadd.f32 1.0, %v3593_v51  ;;  %3612 = vpow2.f32 %v2772_v40  ;;  %v2778_v1 = vmul.f32 -1.442695, %v4298_v56  ;;  %v3249_v3 = vpop.f32.mrb[40].mxu0  ;;  %v1750_v57 = vmul.f32 %v3295_v50, %v4051_v39 }
 0x172   : > { %v3597_v36 = vpop.eup %3596  ;;  %v2945_v61 = vpack.c.bf16 %v2125_v53, %v2124_v23  ;;  %v1988_v30 = vadd.f32 1.0, %v3595_v58  ;;  %v1144_v14 = vpop.f32.mrb[41].mxu1  ;;  %v2776_v7 = vmul.f32 -1.442695, %v4301_v11  ;;  %v3297_v9 = vadd.f32 %v3249_v3, %v3199_v62 }
 0x173   : > { %v3599_v52 = vpop.eup %3598  ;;  %3614 = vrcp.f32 %v1983_v13  ;;  %v1986_v63 = vadd.f32 1.0, %v3597_v36  ;;  %v1625_v33 = vpop.f32.mrb[41].mxu0  ;;  %v4310_v12 = vadd.f32 %v4056_v42, %v1750_v57  ;;  %v1748_v15 = vmul.f32 %v3296_v5, %v4051_v39 }
 0x174   : > { %3017 = vst [vmem:[%s4169_s30 + $0x58] sm:$0xff] %v2945_v61   ;;  %3616 = vrcp.f32 %v1988_v30  ;;  %v1989_v32 = vadd.f32 1.0, %v3599_v52  ;;  %v3298_v10 = vadd.f32 %v1625_v33, %v1144_v14  ;;  %v3200_v26 = vpop.f32.mrb[42].mxu1  ;;  %v3250_v28 = vpop.f32.mrb[42].mxu0  ;;  %v1753_v20 = vmul.f32 %v3297_v9, %v4051_v39 }
 0x175   : > { %3618 = vrcp.f32 %v1986_v63  ;;  %v3601_v37 = vpop.eup %3600  ;;  %v3299_v16 = vadd.f32 %v3250_v28, %v3200_v26  ;;  %v1147_v17 = vpop.f32.mrb[43].mxu1  ;;  %v2779_v41 = vmul.f32 -1.442695, %v4310_v12  ;;  %v4318_v44 = vadd.f32 %v4056_v42, %v1748_v15 }
 0x176   : > { %3620 = vrcp.f32 %v1989_v32  ;;  %v1628_v21 = vpop.f32.mrb[43].mxu0  ;;  %v3603_v19 = vpop.eup %3602  ;;  %v2123_v29 = vmul.f32 %v3601_v37, %v4215_v48  ;;  %v1751_v38 = vmul.f32 %v3298_v10, %v4051_v39  ;;  %v4322_v46 = vadd.f32 %v4056_v42, %v1753_v20 }
 0x177   : > { %3622 = vpow2.f32 %v2775_v2  ;;  %v3605_v40 = vpop.eup %3604  ;;  %v2128_v47 = vmul.f32 %v3603_v19, %v4220_v24  ;;  %v2777_v59 = vmul.f32 -1.442695, %v4318_v44  ;;  %v3300_v63 = vadd.f32 %v1628_v21, %v1147_v17 }
 0x178   : > { %3624 = vpow2.f32 %v2773_v0  ;;  %v3607_v45 = vpop.eup %3606  ;;  %v2940_v22 = vpack.c.bf16 %v2123_v29, %v4290_v49  ;;  %v3203_v23 = vpop.f32.mrb[44].mxu1  ;;  %v4329_v53 = vadd.f32 %v4056_v42, %v1751_v38  ;;  %v1754_v49 = vmul.f32 %v3299_v16, %v4051_v39 }
 0x179   : > { %3626 = vpow2.f32 %v2778_v1  ;;  %v3609_v48 = vpop.eup %3608  ;;  %v2129_v34 = vmul.f32 %v3607_v45, %v4232_v60  ;;  %v3253_v58 = vpop.f32.mrb[44].mxu0  ;;  %v2782_v60 = vmul.f32 -1.442695, %v4322_v46  ;;  %v2126_v32 = vmul.f32 %v3605_v40, %v4224_v6 }
 0x17a   : > { %3628 = vpow2.f32 %v2776_v7  ;;  %v3611_v35 = vpop.eup %3610  ;;  %3016 = vst [vmem:[%s4169_s30 + $0x50] sm:$0xff] %v2940_v22   ;;  %v1987_v51 = vadd.f32 1.0, %v3609_v48  ;;  %v1160_v13 = vpop.f32.mrb[45].mxu1  ;;  %v4334_v52 = vadd.f32 %v4056_v42, %v1754_v49  ;;  %v3301_v5 = vadd.f32 %v3253_v58, %v3203_v23 }
 0x17b   : > { %3630 = vpow2.f32 %v2779_v41  ;;  %v3613_v50 = vpop.eup %3612  ;;  %v2955_v24 = vpack.c.bf16 %v2129_v34, %v2128_v47  ;;  %v1992_v36 = vadd.f32 1.0, %v3611_v35  ;;  %v1641_v61 = vpop.f32.mrb[45].mxu0  ;;  %v2780_v9 = vmul.f32 -1.442695, %v4329_v53 }
 0x17c   : > { %3632 = vpow2.f32 %v2777_v59  ;;  %v3204_v30 = vpop.f32.mrb[46].mxu1  ;;  %v1990_v62 = vadd.f32 1.0, %v3613_v50  ;;  %v3254_v0 = vpop.f32.mrb[46].mxu0  ;;  %v3302_v14 = vadd.f32 %v1641_v61, %v1160_v13  ;;  %v2783_v10 = vmul.f32 -1.442695, %v4334_v52 }
 0x17d   : > { %v3615_v2 = vpop.eup %3614  ;;  %3634 = vrcp.f32 %v1987_v51  ;;  %v1163_v1 = vpop.f32.mrb[47].mxu1  ;;  %3019 = vst [vmem:[%s4169_s30 + $0x68] sm:$0xff] %v2955_v24   ;;  %v1752_v26 = vmul.f32 %v3300_v63, %v4051_v39  ;;  %v1757_v6 = vmul.f32 %v3301_v5, %v4051_v39  ;;  %v3303_v20 = vadd.f32 %v3254_v0, %v3204_v30 }
 0x17e   : > { %v3617_v3 = vpop.eup %3616  ;;  %v2127_v57 = vmul.f32 %v3615_v2, %v4241_v27  ;;  %v1644_v33 = vpop.f32.mrb[47].mxu0  ;;  %3636 = vrcp.f32 %v1992_v36  ;;  %v1755_v17 = vmul.f32 %v3302_v14, %v4051_v39  ;;  %v3685_v36 = vld [vmem:[%s4459_s2] ss:$0 sm:$0xff] }
 0x17f   : > { %v3619_v7 = vpop.eup %3618  ;;  %3638 = vpow2.f32 %v2782_v60  ;;  %v2132_v27 = vmul.f32 %v3617_v3, %v4246_v18  ;;  %v4348_v29 = vadd.f32 %v4056_v42, %v1752_v26  ;;  %v4351_v18 = vadd.f32 %v4056_v42, %v1757_v6 }
 0x180   : > { %v3621_v28 = vpop.eup %3620  ;;  %v2950_v37 = vpack.c.bf16 %v2127_v57, %v2126_v32  ;;  %3640 = vrcp.f32 %v1990_v62  ;;  %v4354_v22 = vadd.f32 %v4056_v42, %v1755_v17  ;;  %v1758_v48 = vmul.f32 %v3303_v20, %v4051_v39  ;;  %v3684_v39 = vld [vmem:[%s4458_s1] ss:$0 sm:$0xff] }
 0x181   : > { %v3623_v15 = vpop.eup %3622  ;;  %v2133_v16 = vmul.f32 %v3621_v28, %v4258_v8  ;;  %3642 = vpow2.f32 %v2783_v10  ;;  %v3304_v59 = vadd.f32 %v1644_v33, %v1163_v1  ;;  %v2130_v35 = vmul.f32 %v3619_v7, %v4252_v43 }
 0x182   : > { %v3625_v21 = vpop.eup %3624  ;;  %3018 = vst [vmem:[%s4169_s30 + $0x60] sm:$0xff] %v2950_v37   ;;  %v1993_v19 = vadd.f32 1.0, %v3623_v15  ;;  %3644 = vpow2.f32 %v2780_v9  ;;  %v2781_v49 = vmul.f32 -1.442695, %v4348_v29  ;;  %v2786_v42 = vmul.f32 -1.442695, %v4351_v18 }
 0x183   : > { %v3627_v38 = vpop.eup %3626  ;;  %v2965_v40 = vpack.c.bf16 %v2133_v16, %v2132_v27  ;;  %v1991_v41 = vadd.f32 1.0, %v3625_v21  ;;  %v1756_v50 = vmul.f32 %v3684_v39, %v3304_v59  ;;  %v2784_v43 = vmul.f32 -1.442695, %v4354_v22 }
 0x184   : > { %v3629_v8 = vpop.eup %3628  ;;  %3646 = vrcp.f32 %v1993_v19  ;;  %v1996_v45 = vadd.f32 1.0, %v3627_v38  ;;  %v4369_v60 = vadd.f32 %v3685_v36, %v1758_v48 }
 0x185   : > { %v3631_v47 = vpop.eup %3630  ;;  %3021 = vst [vmem:[%s4169_s30 + $0x78] sm:$0xff] %v2965_v40   ;;  %3648 = vrcp.f32 %v1991_v41  ;;  %v1994_v34 = vadd.f32 1.0, %v3629_v8  ;;  %v4371_v30 = vadd.f32 %v3685_v36, %v1756_v50 }
 0x186   : > { %v3633_v23 = vpop.eup %3632  ;;  %3650 = vrcp.f32 %v1996_v45  ;;  %v1997_v51 = vadd.f32 1.0, %v3631_v47  ;;  %v2787_v1 = vmul.f32 -1.442695, %v4369_v60 }
 0x187   : > { %v3635_v58 = vpop.eup %3634  ;;  %3652 = vrcp.f32 %v1994_v34  ;;  %v1995_v13 = vadd.f32 1.0, %v3633_v23  ;;  %v2785_v57 = vmul.f32 -1.442695, %v4371_v30 }
 0x188   : > { %v2131_v24 = vmul.f32 %v3635_v58, %v4268_v55  ;;  %3654 = vrcp.f32 %v1997_v51  ;;  %v3637_v61 = vpop.eup %3636 }
 0x189   : > { %3656 = vrcp.f32 %v1995_v13  ;;  %v3639_v2 = vpop.eup %3638  ;;  %v2136_v33 = vmul.f32 %v3637_v61, %v4271_v31 }
 0x18a   : > { %v2960_v62 = vpack.c.bf16 %v2131_v24, %v2130_v35  ;;  %3658 = vpow2.f32 %v2781_v49  ;;  %v3641_v63 = vpop.eup %3640  ;;  %v2000_v0 = vadd.f32 1.0, %v3639_v2 }
 0x18b   : > { %3660 = vpow2.f32 %v2786_v42  ;;  %v3643_v55 = vpop.eup %3642  ;;  %v2134_v10 = vmul.f32 %v3641_v63, %v4275_v4 }
 0x18c   : > { %3020 = vst [vmem:[%s4169_s30 + $0x70] sm:$0xff] %v2960_v62   ;;  %3662 = vpow2.f32 %v2784_v43  ;;  %v3645_v3 = vpop.eup %3644  ;;  %v2001_v32 = vadd.f32 1.0, %v3643_v55 }
 0x18d   : > { %3664 = vrcp.f32 %v2000_v0  ;;  %v1998_v6 = vadd.f32 1.0, %v3645_v3 }
 0x18e   : > { %v3647_v5 = vpop.eup %3646  ;;  %3666 = vrcp.f32 %v2001_v32 }
 0x18f   : > { %v3649_v14 = vpop.eup %3648  ;;  %v2137_v7 = vmul.f32 %v3647_v5, %v4284_v25  ;;  %3668 = vpow2.f32 %v2787_v1 }
 0x190   : > { %v3651_v9 = vpop.eup %3650  ;;  %v2135_v26 = vmul.f32 %v3649_v14, %v4295_v54  ;;  %3670 = vpow2.f32 %v2785_v57 }
 0x191   : > { %v3653_v28 = vpop.eup %3652  ;;  %v2975_v37 = vpack.c.bf16 %v2137_v7, %v2136_v33  ;;  %v2140_v31 = vmul.f32 %v3651_v9, %v4298_v56  ;;  %3672 = vrcp.f32 %v1998_v6 }
 0x192   : > { %v3655_v15 = vpop.eup %3654  ;;  %v2970_v27 = vpack.c.bf16 %v2135_v26, %v2134_v10  ;;  %v2138_v4 = vmul.f32 %v3653_v28, %v4301_v11 }
 0x193   : > { %v3657_v16 = vpop.eup %3656  ;;  %3023 = vst [vmem:[%s4169_s30 + $0x88] sm:$0xff] %v2975_v37   ;;  %v2141_v25 = vmul.f32 %v3655_v15, %v4310_v12 }
 0x194   : > { %v3659_v17 = vpop.eup %3658  ;;  %3022 = vst [vmem:[%s4169_s30 + $0x80] sm:$0xff] %v2970_v27   ;;  %v2139_v54 = vmul.f32 %v3657_v16, %v4318_v44 }
 0x195   : > { %v3661_v21 = vpop.eup %3660  ;;  %v2985_v19 = vpack.c.bf16 %v2141_v25, %v2140_v31  ;;  %v1999_v20 = vadd.f32 1.0, %v3659_v17 }
 0x196   : > { %v3663_v38 = vpop.eup %3662  ;;  %v2980_v40 = vpack.c.bf16 %v2139_v54, %v2138_v4  ;;  %v2004_v56 = vadd.f32 1.0, %v3661_v21 }
 0x197   : > { %v3665_v41 = vpop.eup %3664  ;;  %3025 = vst [vmem:[%s4169_s30 + $0x98] sm:$0xff] %v2985_v19   ;;  %3674 = vrcp.f32 %v1999_v20  ;;  %v2002_v8 = vadd.f32 1.0, %v3663_v38 }
 0x198   : > { %3024 = vst [vmem:[%s4169_s30 + $0x90] sm:$0xff] %v2980_v40   ;;  %v3667_v12 = vpop.eup %3666  ;;  %v2144_v48 = vmul.f32 %v3665_v41, %v4322_v46  ;;  %3676 = vrcp.f32 %v2004_v56 }
 0x199   : > { %v3669_v45 = vpop.eup %3668  ;;  %v2145_v11 = vmul.f32 %v3667_v12, %v4334_v52  ;;  %3678 = vrcp.f32 %v2002_v8 }
 0x19a   : > { %v3671_v44 = vpop.eup %3670  ;;  %v2005_v47 = vadd.f32 1.0, %v3669_v45 }
 0x19b   : > { %v2995_v34 = vpack.c.bf16 %v2145_v11, %v2144_v48  ;;  %v2003_v59 = vadd.f32 1.0, %v3671_v44  ;;  %v3673_v23 = vpop.eup %3672 }
 0x19c   : > { %3680 = vrcp.f32 %v2005_v47  ;;  %v2142_v51 = vmul.f32 %v3673_v23, %v4329_v53 }
 0x19d   : > { %3027 = vst [vmem:[%s4169_s30 + $0xa8] sm:$0xff] %v2995_v34   ;;  %3682 = vrcp.f32 %v2003_v59 }
 0x1a1   : > { %v3675_v35 = vpop.eup %3674 }
 0x1a2   : > { %v2143_v46 = vmul.f32 %v3675_v35, %v4348_v29  ;;  %v3677_v52 = vpop.eup %3676 }
 0x1a3   : > { %v3679_v58 = vpop.eup %3678  ;;  %v2148_v39 = vmul.f32 %v3677_v52, %v4351_v18 }
 0x1a4   : > { %v2990_v49 = vpack.c.bf16 %v2143_v46, %v2142_v51  ;;  %v2146_v53 = vmul.f32 %v3679_v58, %v4354_v22 }
 0x1a6   : > { %3026 = vst [vmem:[%s4169_s30 + $0xa0] sm:$0xff] %v2990_v49   ;;  %v3681_v13 = vpop.eup %3680 }
 0x1a7   : > { %v3683_v42 = vpop.eup %3682  ;;  %v2149_v50 = vmul.f32 %v3681_v13, %v4369_v60 }
 0x1a8   : > { %v2147_v29 = vmul.f32 %v3683_v42, %v4371_v30 }
 0x1a9   : > { %v3005_v24 = vpack.c.bf16 %v2149_v50, %v2148_v39 }
 0x1aa   : > { %v3000_v43 = vpack.c.bf16 %v2147_v29, %v2146_v53 }
 0x1ab   : > { %3029 = vst [vmem:[%s4169_s30 + $0xb8] sm:$0xff] %v3005_v24  }
 0x1ac   : > { %3028 = vst [vmem:[%s4169_s30 + $0xb0] sm:$0xff] %v3000_v43  }
 0x1ad   : > { %3699 = shalt.err (!%p3696_p5)
}
 0x1ae   : > { %s3700_s26 = scalar_lea.hbm %s4403_s13, 3072  ;;  %s3704_s5 = scalar_lea.hbm %s4461_s4, 6144 }
 0x1af   : > { %p3701_p6 = scmp.ne.s32.totalorder %s4403_s13, %s3700_s26  ;;  %p3705_p10 = scmp.lt.u32.totalorder %s4403_s13, %s4461_s4 }
 0x1b0   : > { %p3706_p11 = scmp.lt.u32.totalorder %s3704_s5, %s3700_s26  ;;  %p3708_p13 = scmp.lt.u32.totalorder %s3700_s26, %s4403_s13 }
 0x1b1   : > { %p3702_p7 = pnand %p3701_p6, %p3834_p4 }
 0x1b2   : > { %p3707_p12 = por %p3706_p11, %p3705_p10 }
 0x1b3   : > { %p3703_p9 = pneg %p3702_p7 }
 0x1b4   : > { %p3709_p0 = por %p3708_p13, %p3707_p12 }
 0x1b6   : > { %p3710_p1 = pnand %p3709_p0, %p3703_p9 }
 0x1b8   : > { %3713 = shalt.err (!%p3710_p1)
}
 0x1b9   : > { %s3767_s8 = smov 64   ;;  %s3768_s9 = smov 4  }
 0x1ba   : > { %3360 = dma.vmem_to_hbm [thread:$0]  (%p3834_p4), %s4405_s10, 3072, %s4403_s13, %s4411_s18, %s3767_s8, %s3767_s8, %s3768_s9  }
 0x1bb PF: > { %p3366_p2 = scmp.ge.s32.totalorder %s3764_s20, 2  ;;  %s2421_s11 = sand.u32 1, %s3744_s15  }
 0x1bc   : > { %s2422_s12 = scalar_lea.sflag [#allocation3], %s2421_s11 }
 0x1bd   : > { %p3363_p3 = pnand %p3366_p2, %p3841_p8 }
 0x1bf   : > { %3739 = dma.done.wait (!%p3363_p3), %s2422_s12, 3072  }
 0x1c0   : > { %3741 = vsyncadd (!%p3363_p3), %s2422_s12, 4294964224  ;;  %s17_s20 = sadd.s32 1, %s3764_s20   ;;  %s4464_s15 = smov %s3748_s16 }
 0x1c1   : > { %p14_p5 = scmp.ge.s32.totalorder %s17_s20, 4   ;;  %s4465_s16 = smov %s3752_s17 }
 0x1c2   : > { %s4466_s17 = smov %s3847_s28  ;;  %s4467_s18 = smov %s3760_s19 }
 0x1c3   : > { %s4468_s19 = smov %s4470_s23  ;;  %16 = sbr.rel (!%p14_p5) target bundleno = 4 (0x4), region = 76 }
 0x1ca   :  { %2427 = vsyncpa [#allocation3], 1 }
 0x1cb   :  { %2429 = vsyncpa [#allocation3 + $0x1], 1 }

</bundles_post_ra>
